<compile_context>
chip_gen: v7x
topology: tpu7x:2x2x1
jax: 0.10.0
libtpu: 0.0.40
codegen_flags: <defaults>
</compile_context>

<pallas_src>
import functools

import jax
import jax.numpy as jnp
from jax import lax
from jax.experimental import pallas as pl
from jax.experimental.pallas import tpu as pltpu

_LANE = 128
_SUB = 8
_SLAB = _SUB * _LANE  # 1024 elements = one fully populated (8, 128) vreg slab


def _cdiv(a, b):
    return -(-a // b)


def _round_up(x, m):
    return _cdiv(x, m) * m


def _pick_unroll(n):
    # Largest of {8,4,2} dividing n (keeps the unrolled fori_loop remainder-free).
    for u in (8, 4, 2):
        if n % u == 0:
            return u
    return 1


def _default_num_core_splits():
    # Two TensorCores per chip only on v7x; a size-2 "parallel" axis on
    # single-core v5e/v6e would only add an extra resident-output swap.
    try:
        kind = jax.devices()[0].device_kind.lower()
    except Exception:
        return 1
    return 2 if "v7" in kind else 1


def _softplus_sigmoid_neg(z):
    """Return (softplus(-z), sigmoid(-z)) for f32 `z`, sharing one exp chain.

    Stable for any finite z:
      e            = exp(-|z|)                      in (0, 1]
      softplus(-z) = max(-z, 0) + log1p(e)
      sigmoid(-z)  = exp(-z - softplus(-z))         ( = exp(logsigmoid(-z)) )
    3 EUP ops per operand (exp, log1p, exp); no divide, no overflow.
    """
    e = jnp.exp(-jnp.abs(z))
    sp = jnp.maximum(-z, 0.0) + jnp.log1p(e)
    sig_neg = jnp.exp(-z - sp)
    return sp, sig_neg


def _focal_kl_kernel(x_ref, t_ref, w_ref, out_ref, *, gamma, groups_per_tile,
                     steps, valid_groups, need_mask, unroll):
    c = pl.program_id(0)
    i = pl.program_id(1)
    base_group = (c * steps + i) * groups_per_tile

    @pl.when(i == 0)
    def _init():
        out_ref[...] = jnp.zeros_like(out_ref)

    def body(g, acc):
        x = x_ref[g].astype(jnp.float32)   # (8, 128) group, upcast in-register
        t = t_ref[g].astype(jnp.float32)
        w = w_ref[g].astype(jnp.float32)

        sp_x, one_m_px = _softplus_sigmoid_neg(x)   # one_m_px = 1 - sigmoid(x)
        sp_t, one_m_py = _softplus_sigmoid_neg(t)   # one_m_py = 1 - sigmoid(t)

        # Bernoulli-KL identity:
        #   kl(logpx, py) + kl(log1mpx, 1 - py)
        #     = softplus(-x) - softplus(-t) + sigmoid(-t) * (x - t)
        # (py, 1-py are strictly in (0,1) for finite logits, so the reference's
        #  where(target > 0, ...) guards are no-ops.)
        kl = sp_x - sp_t + one_m_py * (x - t)

        d = jnp.abs(one_m_px - one_m_py)            # == |py - px|
        if gamma == 1.0:
            focal = d
        elif gamma == 2.0:
            focal = d * d
        elif gamma == 0.5:
            focal = jnp.sqrt(d)
        else:
            focal = jnp.power(d, gamma)

        contrib = focal * kl * w
        if need_mask:
            # Ragged tail: groups beyond the real array hold unspecified data.
            # Use a select (not a multiply) so potential inf/NaN garbage in the
            # discarded branch cannot leak into the accumulator.
            contrib = jnp.where(base_group + g < valid_groups, contrib, 0.0)
        return acc + contrib

    # vreg-resident accumulator; one VMEM read-modify-write of (8,128) per step.
    acc = lax.fori_loop(0, groups_per_tile, body,
                        jnp.zeros((_SUB, _LANE), jnp.float32),
                        unroll=unroll)
    out_ref[...] += acc


def focal_kl_loss(inputs, target, label_weights, avg_factor, *,
                  gamma=1.0, loss_weight=1.0, tile_rows=4096,
                  num_core_splits=None):
    """Pallas implementation of FocalKLLoss.forward (use_sigmoid=True)."""
    N, C = inputs.shape
    total = N * C
    if num_core_splits is None:
        num_core_splits = _default_num_core_splits()
    num_core_splits = max(1, int(num_core_splits))

    # ---- lane-dense slab layout --------------------------------------------
    # Flatten (N, C) and view it as (G, 8, 128) so every vreg is fully
    # populated regardless of C.  Pad only to the minimal 1024-element slab
    # multiple (the reshape is metadata-only when already aligned); the ragged
    # grid tail is masked inside the kernel instead of padding to tile
    # multiples, so the old whole-array pad copies are gone.
    padded_total = _round_up(total, _SLAB)
    pad = padded_total - total
    G = padded_total // _SLAB

    def _prep(a):
        flat = a.reshape(-1)
        if pad:
            flat = jnp.pad(flat, (0, pad))   # zero pad -> finite math, w=0 there
        return flat.reshape(G, _SUB, _LANE)

    x_p = _prep(inputs)          # keep caller dtype (e.g. bf16) on the wire
    t_p = _prep(target)

    # Weight slab: generated (broadcast -> pad, one fused write) at the input
    # dtype; never materialized as a separate f32 (N, C) plane first.
    w_dtype = inputs.dtype
    w_flat = jnp.broadcast_to(label_weights.astype(w_dtype)[:, None],
                              (N, C)).reshape(-1)
    if pad:
        w_flat = jnp.pad(w_flat, (0, pad))
    w_p = w_flat.reshape(G, _SUB, _LANE)

    # ---- tiling --------------------------------------------------------------
    groups_per_tile = max(1, min(int(tile_rows) // _SUB,
                                 _cdiv(G, num_core_splits)))
    tiles = _cdiv(G, groups_per_tile)
    steps = _cdiv(tiles, num_core_splits)
    need_mask = num_core_splits * steps * groups_per_tile != G
    unroll = _pick_unroll(groups_per_tile)
    last_tile = tiles - 1

    def in_map(c, i):
        # Clamp so fully out-of-range tiles (possible when tiles % splits != 0)
        # re-read the last real tile; their contribution is masked to zero.
        return (jnp.minimum(c * steps + i, last_tile), 0, 0)

    in_spec = pl.BlockSpec((groups_per_tile, _SUB, _LANE), in_map)

    kernel = functools.partial(
        _focal_kl_kernel, gamma=float(gamma), groups_per_tile=groups_per_tile,
        steps=steps, valid_groups=G, need_mask=need_mask, unroll=unroll)

    # Double-buffered input DMA footprint (+ slack); cap so it also fits v7x's
    # 64 MiB-per-TensorCore VMEM.
    bytes_per_elem = (2 * jnp.dtype(inputs.dtype).itemsize
                      + jnp.dtype(w_dtype).itemsize)
    buf_bytes = 2 * groups_per_tile * _SLAB * bytes_per_elem
    vmem_limit = int(min(64 * 1024 * 1024,
                         max(32 * 1024 * 1024, buf_bytes + 8 * 1024 * 1024)))

    partials = pl.pallas_call(
        kernel,
        out_shape=jax.ShapeDtypeStruct((num_core_splits, _SUB, _LANE),
                                       jnp.float32),
        grid_spec=pltpu.PrefetchScalarGridSpec(
            num_scalar_prefetch=0,
            grid=(num_core_splits, steps),
            in_specs=[in_spec, in_spec, in_spec],
            out_specs=pl.BlockSpec((None, _SUB, _LANE), lambda c, i: (c, 0, 0)),
        ),
        compiler_params=pltpu.CompilerParams(
            dimension_semantics=("parallel", "arbitrary"),
            vmem_limit_bytes=vmem_limit,
        ),
    )(x_p, t_p, w_p)

    # Single tiny cross-lane / cross-core reduction + scalar glue in XLA.
    total_sum = jnp.sum(partials)
    return (total_sum / jnp.asarray(avg_factor, jnp.float32)
            * jnp.float32(loss_weight))


# Jitted entry point so the (small) wrapper-side ops fuse into single kernels.
focal_kl_loss_jit = jax.jit(
    focal_kl_loss,
    static_argnames=("gamma", "loss_weight", "tile_rows", "num_core_splits"))


def _reference(inputs, target, label_weights, avg_factor, gamma=1.0,
               loss_weight=1.0):
    """Pure-JAX mirror of the PyTorch forward, for correctness checking."""
    logpx = -jax.nn.softplus(-inputs)
    log1mpx = -inputs + logpx
    px = jnp.exp(logpx)
    py = jax.nn.sigmoid(target)
    focal = jnp.power(jnp.abs(py - px), gamma)
    loss1 = jnp.where(py > 0, py * (jnp.log(py) - logpx), 0.0)
    loss2 = jnp.where(1 - py > 0, (1 - py) * (jnp.log(1 - py) - log1mpx), 0.0)
    loss = focal * (loss1 + loss2)
    return jnp.sum(loss * label_weights[:, None]) / avg_factor * loss_weight


if __name__ == "__main__":
    key = jax.random.PRNGKey(0)
    k = jax.random.split(key, 9)

    # Case 1: small f32, gamma=1 (defaults).
    N1, C1 = 16, 8
    x1 = jax.random.normal(k[0], (N1, C1), dtype=jnp.float32)
    t1 = jax.random.normal(k[1], (N1, C1), dtype=jnp.float32)
    w1 = jax.random.uniform(k[2], (N1,), dtype=jnp.float32)
    out1 = jax.block_until_ready(focal_kl_loss_jit(x1, t1, w1, float(N1)))
    ref1 = _reference(x1, t1, w1, float(N1), 1.0, 1.0)
    assert jnp.allclose(out1, ref1, rtol=1e-4, atol=1e-6), (out1, ref1)

    # Case 2: unaligned element count (6000), multi-step grid with a ragged
    # last tile (masked in-kernel), gamma=2 and the loss_weight scalar path.
    N2, C2 = 300, 20
    x2 = jax.random.normal(k[3], (N2, C2), dtype=jnp.float32)
    t2 = jax.random.normal(k[4], (N2, C2), dtype=jnp.float32)
    w2 = jax.random.uniform(k[5], (N2,), dtype=jnp.float32)
    out2 = jax.block_until_ready(
        focal_kl_loss_jit(x2, t2, w2, float(N2), gamma=2.0, loss_weight=0.5,
                          tile_rows=32))
    ref2 = _reference(x2, t2, w2, float(N2), 2.0, 0.5)
    assert jnp.allclose(out2, ref2, rtol=1e-4, atol=1e-6), (out2, ref2)

    # Case 3: explicit 2-way core split (fully out-of-range tile on the second
    # split gets clamped + masked) and the gamma=0.5 (sqrt) path.
    out3 = jax.block_until_ready(
        focal_kl_loss_jit(x2, t2, w2, float(N2), gamma=0.5, loss_weight=1.0,
                          tile_rows=16, num_core_splits=2))
    ref3 = _reference(x2, t2, w2, float(N2), 0.5, 1.0)
    assert jnp.allclose(out3, ref3, rtol=1e-4, atol=1e-6), (out3, ref3)

    # Case 4: bf16 logits, element count a multiple of 1024 -> zero wrapper-side
    # copies; weights ride the wire at the input dtype (bf16).
    N4, C4 = 64, 32
    x4 = jax.random.normal(k[6], (N4, C4), dtype=jnp.bfloat16)
    t4 = jax.random.normal(k[7], (N4, C4), dtype=jnp.bfloat16)
    w4 = jax.random.uniform(k[8], (N4,), dtype=jnp.float32)
    out4 = jax.block_until_ready(focal_kl_loss_jit(x4, t4, w4, float(N4)))
    ref4 = _reference(x4.astype(jnp.float32), t4.astype(jnp.float32),
                      w4.astype(jnp.bfloat16).astype(jnp.float32),
                      float(N4), 1.0, 1.0)
    assert jnp.allclose(out4, ref4, rtol=1e-3, atol=1e-4), (out4, ref4)

    print("KERNEL_OK")
</pallas_src>

<mosaic_0001>
module attributes {stable_mosaic.version = 11 : i64} {
  func.func @_focal_kl_kernel(%arg0: i32, %arg1: i32, %arg2: memref<1x8x128xf32, #tpu.memory_space<vmem>>, %arg3: memref<1x8x128xf32, #tpu.memory_space<vmem>>, %arg4: memref<1x8x128xf32, #tpu.memory_space<vmem>>, %arg5: memref<1x8x128xf32, #tpu.memory_space<vmem>>) attributes {dimension_semantics = [#tpu.dimension_semantics<parallel>, #tpu.dimension_semantics<arbitrary>], iteration_bounds = array<i64: 1, 1>, scalar_prefetch = 0 : i64, scratch_operands = 0 : i64, tpu.core_type = #tpu.core_type<tc>, window_params = [{transform_indices = @transform_0, window_bounds = array<i64: 1, 8, 128>}, {transform_indices = @transform_1, window_bounds = array<i64: 1, 8, 128>}, {transform_indices = @transform_2, window_bounds = array<i64: 1, 8, 128>}, {transform_indices = @transform_3, window_bounds = array<i64: 1, 8, 128>}]} {
    %c0_i32 = arith.constant 0 : i32
    %0 = arith.cmpi eq, %arg1, %c0_i32 : i32
    %1 = arith.extui %0 : i1 to i32
    %c0_i32_0 = arith.constant 0 : i32
    %2 = arith.cmpi ne, %1, %c0_i32_0 : i32
    scf.if %2 {
      %cst_21 = arith.constant 0.000000e+00 : f32
      %56 = vector.broadcast %cst_21 : f32 to vector<8x128xf32>
      %c0_22 = arith.constant 0 : index
      %c0_23 = arith.constant 0 : index
      %c0_24 = arith.constant 0 : index
      %57 = vector.load %arg5[%c0_22, %c0_23, %c0_24] : memref<1x8x128xf32, #tpu.memory_space<vmem>>, vector<1x8x128xf32>
      %58 = vector.shape_cast %57 : vector<1x8x128xf32> to vector<8x128xf32>
      %59 = vector.shape_cast %56 : vector<8x128xf32> to vector<1x8x128xf32>
      tpu.vector_store %arg5[%c0_22, %c0_23, %c0_24], %59 {strides = array<i32>} : memref<1x8x128xf32, #tpu.memory_space<vmem>>, vector<1x8x128xf32>,
    } else {
    }
    %cst = arith.constant 0.000000e+00 : f32
    %3 = vector.broadcast %cst : f32 to vector<8x128xf32>
    %c0_i32_1 = arith.constant 0 : i32
    %4 = arith.index_cast %c0_i32_1 : i32 to index
    %c0 = arith.constant 0 : index
    %c0_2 = arith.constant 0 : index
    %5 = vector.load %arg2[%4, %c0, %c0_2] : memref<1x8x128xf32, #tpu.memory_space<vmem>>, vector<1x8x128xf32>
    %6 = vector.shape_cast %5 : vector<1x8x128xf32> to vector<8x128xf32>
    %7 = arith.index_cast %c0_i32_1 : i32 to index
    %c0_3 = arith.constant 0 : index
    %c0_4 = arith.constant 0 : index
    %8 = vector.load %arg3[%7, %c0_3, %c0_4] : memref<1x8x128xf32, #tpu.memory_space<vmem>>, vector<1x8x128xf32>
    %9 = vector.shape_cast %8 : vector<1x8x128xf32> to vector<8x128xf32>
    %10 = arith.index_cast %c0_i32_1 : i32 to index
    %c0_5 = arith.constant 0 : index
    %c0_6 = arith.constant 0 : index
    %11 = vector.load %arg4[%10, %c0_5, %c0_6] : memref<1x8x128xf32, #tpu.memory_space<vmem>>, vector<1x8x128xf32>
    %12 = vector.shape_cast %11 : vector<1x8x128xf32> to vector<8x128xf32>
    %13 = math.absf %6 : vector<8x128xf32>
    %cst_7 = arith.constant 0.000000e+00 : f32
    %14 = vector.broadcast %cst_7 : f32 to vector<8x128xf32>
    %15 = arith.subf %14, %13 : vector<8x128xf32>
    %16 = math.exp %15 : vector<8x128xf32>
    %cst_8 = arith.constant 0.000000e+00 : f32
    %17 = vector.broadcast %cst_8 : f32 to vector<8x128xf32>
    %18 = arith.subf %17, %6 : vector<8x128xf32>
    %cst_9 = arith.constant 0.000000e+00 : f32
    %19 = vector.broadcast %cst_9 : f32 to vector<8x128xf32>
    %20 = arith.maximumf %18, %19 : vector<8x128xf32>
    %21 = math.log1p %16 : vector<8x128xf32>
    %22 = arith.addf %20, %21 : vector<8x128xf32>
    %cst_10 = arith.constant 0.000000e+00 : f32
    %23 = vector.broadcast %cst_10 : f32 to vector<8x128xf32>
    %24 = arith.subf %23, %6 : vector<8x128xf32>
    %25 = arith.subf %24, %22 : vector<8x128xf32>
    %26 = math.exp %25 : vector<8x128xf32>
    %27 = math.absf %9 : vector<8x128xf32>
    %cst_11 = arith.constant 0.000000e+00 : f32
    %28 = vector.broadcast %cst_11 : f32 to vector<8x128xf32>
    %29 = arith.subf %28, %27 : vector<8x128xf32>
    %30 = math.exp %29 : vector<8x128xf32>
    %cst_12 = arith.constant 0.000000e+00 : f32
    %31 = vector.broadcast %cst_12 : f32 to vector<8x128xf32>
    %32 = arith.subf %31, %9 : vector<8x128xf32>
    %cst_13 = arith.constant 0.000000e+00 : f32
    %33 = vector.broadcast %cst_13 : f32 to vector<8x128xf32>
    %34 = arith.maximumf %32, %33 : vector<8x128xf32>
    %35 = math.log1p %30 : vector<8x128xf32>
    %36 = arith.addf %34, %35 : vector<8x128xf32>
    %cst_14 = arith.constant 0.000000e+00 : f32
    %37 = vector.broadcast %cst_14 : f32 to vector<8x128xf32>
    %38 = arith.subf %37, %9 : vector<8x128xf32>
    %39 = arith.subf %38, %36 : vector<8x128xf32>
    %40 = math.exp %39 : vector<8x128xf32>
    %41 = arith.subf %22, %36 : vector<8x128xf32>
    %42 = arith.subf %6, %9 : vector<8x128xf32>
    %43 = arith.mulf %40, %42 : vector<8x128xf32>
    %44 = arith.addf %41, %43 : vector<8x128xf32>
    %45 = arith.subf %26, %40 : vector<8x128xf32>
    %46 = math.absf %45 : vector<8x128xf32>
    %47 = arith.mulf %46, %44 : vector<8x128xf32>
    %48 = arith.mulf %47, %12 : vector<8x128xf32>
    %49 = arith.addf %3, %48 : vector<8x128xf32>
    %c1_i32 = arith.constant 1 : i32
    %c0_15 = arith.constant 0 : index
    %c0_16 = arith.constant 0 : index
    %c0_17 = arith.constant 0 : index
    %50 = vector.load %arg5[%c0_15, %c0_16, %c0_17] : memref<1x8x128xf32, #tpu.memory_space<vmem>>, vector<1x8x128xf32>
    %51 = vector.shape_cast %50 : vector<1x8x128xf32> to vector<8x128xf32>
    %52 = arith.addf %51, %49 : vector<8x128xf32>
    %c0_18 = arith.constant 0 : index
    %c0_19 = arith.constant 0 : index
    %c0_20 = arith.constant 0 : index
    %53 = vector.load %arg5[%c0_18, %c0_19, %c0_20] : memref<1x8x128xf32, #tpu.memory_space<vmem>>, vector<1x8x128xf32>
    %54 = vector.shape_cast %53 : vector<1x8x128xf32> to vector<8x128xf32>
    %55 = vector.shape_cast %52 : vector<8x128xf32> to vector<1x8x128xf32>
    tpu.vector_store %arg5[%c0_18, %c0_19, %c0_20], %55 {strides = array<i32>} : memref<1x8x128xf32, #tpu.memory_space<vmem>>, vector<1x8x128xf32>,
    return
  }
  func.func @transform_0(%arg0: i32, %arg1: i32) -> (i32, i32, i32) {
    %c1_i32 = arith.constant 1 : i32
    %0 = arith.muli %arg0, %c1_i32 : i32
    %1 = arith.addi %0, %arg1 : i32
    %c0_i32 = arith.constant 0 : i32
    %2 = arith.minsi %1, %c0_i32 : i32
    %c0_i32_0 = arith.constant 0 : i32
    %c0_i32_1 = arith.constant 0 : i32
    %c0_i32_2 = arith.constant 0 : i32
    return %2, %c0_i32_0, %c0_i32_1 : i32, i32, i32
  }
  func.func @transform_1(%arg0: i32, %arg1: i32) -> (i32, i32, i32) {
    %c1_i32 = arith.constant 1 : i32
    %0 = arith.muli %arg0, %c1_i32 : i32
    %1 = arith.addi %0, %arg1 : i32
    %c0_i32 = arith.constant 0 : i32
    %2 = arith.minsi %1, %c0_i32 : i32
    %c0_i32_0 = arith.constant 0 : i32
    %c0_i32_1 = arith.constant 0 : i32
    %c0_i32_2 = arith.constant 0 : i32
    return %2, %c0_i32_0, %c0_i32_1 : i32, i32, i32
  }
  func.func @transform_2(%arg0: i32, %arg1: i32) -> (i32, i32, i32) {
    %c1_i32 = arith.constant 1 : i32
    %0 = arith.muli %arg0, %c1_i32 : i32
    %1 = arith.addi %0, %arg1 : i32
    %c0_i32 = arith.constant 0 : i32
    %2 = arith.minsi %1, %c0_i32 : i32
    %c0_i32_0 = arith.constant 0 : i32
    %c0_i32_1 = arith.constant 0 : i32
    %c0_i32_2 = arith.constant 0 : i32
    return %2, %c0_i32_0, %c0_i32_1 : i32, i32, i32
  }
  func.func @transform_3(%arg0: i32, %arg1: i32) -> (i32, i32, i32) {
    %c0_i32 = arith.constant 0 : i32
    %c0_i32_0 = arith.constant 0 : i32
    %c0_i32_1 = arith.constant 0 : i32
    return %arg0, %c0_i32, %c0_i32_0 : i32, i32, i32
  }
}

</mosaic_0001>

<bundles_post_ra>
// kernel: focal_kl_loss.1
= control target key start
LH: loop header
LB: loop body
LE: loop exit
PB: predicated region body
PF: predicated region fallthrough
CT: control target
= control target key end

     0   :  { %s220_s0 = inlined_call_operand.vmem [shape: f32[1,8,128], index: 0, kind: input, shape index: {}]   ;;  %s221_s1 = inlined_call_operand.vmem [shape: f32[1,8,128], index: 1, kind: input, shape index: {}]   ;;  %s222_s2 = inlined_call_operand.vmem [shape: f32[1,8,128], index: 2, kind: input, shape index: {}]   ;;  %s223_s3 = inlined_call_operand.vmem [shape: f32[1,8,128], index: 3, kind: output, shape index: {}]  }
   0x1   :  { %v100_v0 = vld [vmem:[%s220_s0] sm:$0xff] }
   0x2   :  { %v101_v1 = vld [vmem:[%s221_s1] sm:$0xff]  ;;  %v103_v2 = vand.u32 2147483647, %v100_v0  ;;  %v107_v15 = vsub.f32 0.0, %v100_v0 }
   0x3   :  { %v122_v3 = vand.u32 2147483647, %v101_v1  ;;  %v126_v18 = vsub.f32 0.0, %v101_v1  ;;  %v142_v36 = vsub.f32 %v100_v0, %v101_v1  ;;  %v102_v44 = vld [vmem:[%s222_s2] sm:$0xff] }
   0x4   :  { %v104_v4 = vsub.f32 0.0, %v103_v2  ;;  %v108_v22 = vmax.f32 %v107_v15, 0.0 }
   0x5   :  { %v123_v5 = vsub.f32 0.0, %v122_v3  ;;  %v127_v26 = vmax.f32 %v126_v18, 0.0 }
   0x6   :  { %v105_v6 = vmul.f32 1.442695, %v104_v4 }
   0x7   :  { %v124_v7 = vmul.f32 1.442695, %v123_v5 }
   0x8   :  { %176 = vpow2.f32 %v105_v6 }
   0x9   :  { %178 = vpow2.f32 %v124_v7 }
  0x12   :  { %v177_v8 = vpop.eup %176 }
  0x13   :  { %v179_v9 = vpop.eup %178  ;;  %v109_v10 = vadd.f32 1.0, %v177_v8  ;;  %v112_v12 = vmul.f32 -0.5, %v177_v8  ;;  %v115_v16 = vand.u32 2147483647, %v177_v8 }
  0x14   :  { %v128_v11 = vadd.f32 1.0, %v179_v9  ;;  %v131_v13 = vmul.f32 -0.5, %v179_v9  ;;  %v134_v19 = vand.u32 2147483647, %v179_v9 }
  0x15   :  { %180 = vlog2.f32 %v109_v10  ;;  %v113_v14 = vadd.f32 1.0, %v112_v12  ;;  %vm116_vm0 = vcmp.lt.f32.partialorder %v115_v16, 0.0004427343 }
  0x16   :  { %182 = vlog2.f32 %v128_v11  ;;  %v132_v17 = vadd.f32 1.0, %v131_v13  ;;  %vm135_vm1 = vcmp.lt.f32.partialorder %v134_v19, 0.0004427343 }
  0x17   :  { %v114_v20 = vmul.f32 %v177_v8, %v113_v14 }
  0x18   :  { %v133_v23 = vmul.f32 %v179_v9, %v132_v17 }
  0x1f   :  { %v181_v21 = vpop.eup %180 }
  0x20   :  { %v183_v24 = vpop.eup %182  ;;  %v111_v25 = vmul.f32 0.6931472, %v181_v21 }
  0x21   :  { %v130_v27 = vmul.f32 0.6931472, %v183_v24 }
  0x22   :  { %v117_v28 = vsel %vm116_vm0, %v114_v20, %v111_v25 }
  0x23   :  { %v118_v29 = vadd.f32 %v117_v28, %v108_v22  ;;  %v136_v30 = vsel %vm135_vm1, %v133_v23, %v130_v27 }
  0x24   :  { %v137_v31 = vadd.f32 %v136_v30, %v127_v26 }
  0x25   :  { %v119_v32 = vsub.f32 %v107_v15, %v118_v29 }
  0x26   :  { %v138_v33 = vsub.f32 %v126_v18, %v137_v31  ;;  %v141_v38 = vsub.f32 %v118_v29, %v137_v31 }
  0x27   :  { %v120_v34 = vmul.f32 1.442695, %v119_v32 }
  0x28   :  { %v139_v35 = vmul.f32 1.442695, %v138_v33 }
  0x29   :  { %184 = vpow2.f32 %v120_v34 }
  0x2a   :  { %186 = vpow2.f32 %v139_v35 }
  0x33   :  { %v185_v37 = vpop.eup %184 }
  0x34   :  { %v187_v39 = vpop.eup %186 }
  0x35   :  { %v143_v40 = vmul.f32 %v187_v39, %v142_v36  ;;  %v145_v41 = vsub.f32 %v185_v37, %v187_v39 }
  0x37   :  { %v144_v42 = vadd.f32 %v143_v40, %v141_v38  ;;  %v146_v43 = vand.u32 2147483647, %v145_v41 }
  0x39   :  { %v147_v45 = vmul.f32 %v146_v43, %v144_v42 }
  0x3b   :  { %v148_v46 = vmul.f32 %v147_v45, %v102_v44 }
  0x3d   :  { %152 = vst [vmem:[%s223_s3] sm:$0xff] %v148_v46 }

</bundles_post_ra>
